<compile_context>
chip_gen: v7x
topology: tpu7x:2x2x1
jax: 0.10.0
libtpu: 0.0.40
codegen_flags: <defaults>
</compile_context>

<pallas_src>
import jax
import jax.numpy as jnp
from jax.experimental import pallas as pl
from jax.experimental.pallas import tpu as pltpu

NEG_SLOPE = 0.01  # nn.LeakyReLU default negative_slope


def mlp_kernel(x_ref, w1_ref, b1_ref, w2_ref, b2_ref, o_ref):
    # x_ref:  (C_in, TN)      bf16   tokens on lanes (lane-dense loads)
    # w1_ref: (hidden, C_in)  bf16   PyTorch Conv2d (out,in) layout, no transpose
    # b1_ref: (hidden, 1)     f32
    # w2_ref: (C_out, hidden) bf16
    # b2_ref: (C_out, 1)      f32
    # o_ref:  (C_out, TN)     f32    lane-dense stores
    h = jnp.dot(w1_ref[...], x_ref[...], preferred_element_type=jnp.float32)
    h = h + b1_ref[...]
    h = jnp.where(h > 0, h, NEG_SLOPE * h)  # LeakyReLU in f32
    # Dropout with p=0 is the identity (train or eval) -> no-op.
    # TODO(synk): stochastic dropout (p>0, training) would use pltpu.prng_* here.
    h = h.astype(w2_ref.dtype)
    out = jnp.dot(w2_ref[...], h, preferred_element_type=jnp.float32)
    out = out + b2_ref[...]
    o_ref[...] = out.astype(o_ref.dtype)


def mlp_pallas(x_nchw, w1, b1, w2, b2, *, tile_n=1024, compute_dtype=jnp.bfloat16):
    """x_nchw: (N, C_in, H, W). w1: (hidden, C_in), b1: (hidden,),
    w2: (C_out, hidden), b2: (C_out,)  — PyTorch Conv2d(k=1) weight layout."""
    N, C_in, H, W = x_nchw.shape
    hidden = w1.shape[0]
    C_out = w2.shape[0]
    hw = H * W

    # NCHW -> (N, C_in, H*W): free reshape, tokens end up on the lane axis.
    x3 = x_nchw.reshape(N, C_in, hw).astype(compute_dtype)

    # Lane tile: multiple of 128, large (per-step overhead amortization), but not
    # bigger than the (128-rounded) spatial extent so tiny inputs aren't over-padded.
    tile_n = max(128, (tile_n // 128) * 128)
    tile_n = min(tile_n, pl.cdiv(hw, 128) * 128)
    hw_pad = pl.cdiv(hw, tile_n) * tile_n
    if hw_pad != hw:
        x3 = jnp.pad(x3, ((0, 0), (0, 0), (0, hw_pad - hw)))

    # PyTorch (out, in) weights are already the right orientation for W @ x:
    # no transposes in the per-call path.  Biases become (out, 1) columns (f32).
    w1_c = w1.astype(compute_dtype)
    w2_c = w2.astype(compute_dtype)
    b1_c = b1.reshape(hidden, 1).astype(jnp.float32)
    b2_c = b2.reshape(C_out, 1).astype(jnp.float32)

    grid = (N, hw_pad // tile_n)  # both axes independent -> megacore-shardable

    # TODO(synk): for large C_in/hidden (non-toy channel counts) add a K grid axis
    # with an f32 VMEM accumulator instead of keeping full weight slabs resident.
    out3 = pl.pallas_call(
        mlp_kernel,
        out_shape=jax.ShapeDtypeStruct((N, C_out, hw_pad), x_nchw.dtype),
        grid_spec=pltpu.PrefetchScalarGridSpec(
            num_scalar_prefetch=0,
            grid=grid,
            in_specs=[
                # x block: batch squeezed, kernel sees (C_in, tile_n)
                pl.BlockSpec((None, C_in, tile_n), lambda b, t: (b, 0, t)),
                # weights / biases: tiny, fully resident, same block every step
                pl.BlockSpec((hidden, C_in), lambda b, t: (0, 0)),
                pl.BlockSpec((hidden, 1), lambda b, t: (0, 0)),
                pl.BlockSpec((C_out, hidden), lambda b, t: (0, 0)),
                pl.BlockSpec((C_out, 1), lambda b, t: (0, 0)),
            ],
            out_specs=pl.BlockSpec((None, C_out, tile_n), lambda b, t: (b, 0, t)),
        ),
        compiler_params=pltpu.CompilerParams(
            dimension_semantics=("parallel", "parallel"),
            # Explicit VMEM cap: safe on v5e (16 MiB default scoped) and within
            # v7x's 64 MiB physical budget; blocks here are only a few 100 KB.
            vmem_limit_bytes=32 * 1024 * 1024,
        ),
    )(x3, w1_c, b1_c, w2_c, b2_c)

    if hw_pad != hw:
        out3 = out3[:, :, :hw]
    return out3.reshape(N, C_out, H, W)


def mlp_reference(x_nchw, w1, b1, w2, b2):
    """Plain-JAX f32 reference matching the PyTorch forward."""
    N, C_in, H, W = x_nchw.shape
    x = x_nchw.reshape(N, C_in, H * W)
    h = jnp.einsum("oc,ncs->nos", w1, x) + b1[None, :, None]
    h = jnp.where(h > 0, h, NEG_SLOPE * h)
    o = jnp.einsum("oh,nhs->nos", w2, h) + b2[None, :, None]
    return o.reshape(N, -1, H, W)


if __name__ == "__main__":
    # Small shapes consistent with the module: batch=2, in_dim=4, spatial=16x16,
    # hidden_dim=32, out_dim=in_dim=4.
    N, C_in, Hs, Ws = 2, 4, 16, 16
    hidden, C_out = 32, 4

    key = jax.random.PRNGKey(0)
    k_x, k_w1, k_b1, k_w2, k_b2 = jax.random.split(key, 5)

    x = jax.random.normal(k_x, (N, C_in, Hs, Ws), dtype=jnp.float32)
    # Conv2d weight shape (out, in, 1, 1) squeezed to (out, in).
    w1 = jax.random.normal(k_w1, (hidden, C_in), dtype=jnp.float32) * 0.1
    b1 = jax.random.normal(k_b1, (hidden,), dtype=jnp.float32) * 0.1
    w2 = jax.random.normal(k_w2, (C_out, hidden), dtype=jnp.float32) * 0.1
    b2 = jax.random.normal(k_b2, (C_out,), dtype=jnp.float32) * 0.1

    out = mlp_pallas(x, w1, b1, w2, b2)
    out = jax.block_until_ready(out)

    ref = mlp_reference(x, w1, b1, w2, b2)
    assert out.shape == (N, C_out, Hs, Ws), out.shape
    # bf16 inputs with f32 accumulation vs pure-f32 reference -> relaxed tolerance.
    max_err = float(jnp.max(jnp.abs(out - ref)))
    assert jnp.allclose(out, ref, atol=5e-2, rtol=5e-2), max_err

    print("KERNEL_OK")
</pallas_src>

<mosaic_0001>
module attributes {stable_mosaic.version = 11 : i64} {
  func.func @mlp_kernel(%arg0: i32, %arg1: i32, %arg2: memref<1x4x256xbf16, #tpu.memory_space<vmem>>, %arg3: memref<32x4xbf16, #tpu.memory_space<vmem>>, %arg4: memref<32x1xf32, #tpu.memory_space<vmem>>, %arg5: memref<4x32xbf16, #tpu.memory_space<vmem>>, %arg6: memref<4x1xf32, #tpu.memory_space<vmem>>, %arg7: memref<1x4x256xf32, #tpu.memory_space<vmem>>) attributes {dimension_semantics = [#tpu.dimension_semantics<parallel>, #tpu.dimension_semantics<parallel>], iteration_bounds = array<i64: 2, 1>, scalar_prefetch = 0 : i64, scratch_operands = 0 : i64, tpu.core_type = #tpu.core_type<tc>, window_params = [{transform_indices = @transform_0, window_bounds = array<i64: 1, 4, 256>}, {pipeline_mode = #tpu.pipeline_mode<synchronous>, transform_indices = @transform_1, window_bounds = array<i64: 32, 4>}, {pipeline_mode = #tpu.pipeline_mode<synchronous>, transform_indices = @transform_2, window_bounds = array<i64: 32, 1>}, {pipeline_mode = #tpu.pipeline_mode<synchronous>, transform_indices = @transform_3, window_bounds = array<i64: 4, 32>}, {pipeline_mode = #tpu.pipeline_mode<synchronous>, transform_indices = @transform_4, window_bounds = array<i64: 4, 1>}, {transform_indices = @transform_5, window_bounds = array<i64: 1, 4, 256>}]} {
    %c0 = arith.constant 0 : index
    %c0_0 = arith.constant 0 : index
    %0 = vector.load %arg3[%c0, %c0_0] : memref<32x4xbf16, #tpu.memory_space<vmem>>, vector<32x4xbf16>
    %c0_1 = arith.constant 0 : index
    %c0_2 = arith.constant 0 : index
    %c0_3 = arith.constant 0 : index
    %1 = vector.load %arg2[%c0_1, %c0_2, %c0_3] : memref<1x4x256xbf16, #tpu.memory_space<vmem>>, vector<1x4x256xbf16>
    %2 = vector.shape_cast %1 : vector<1x4x256xbf16> to vector<4x256xbf16>
    %cst = arith.constant dense<0.000000e+00> : vector<32x256xf32>
    %3 = tpu.matmul %0, %2, %cst {dimension_numbers = #tpu.dot_dimension_numbers<[1], [0], [0], [1], [0, 0, 1, 1], [], []>} : vector<32x4xbf16>, vector<4x256xbf16>, vector<32x256xf32> -> vector<32x256xf32>
    %c0_4 = arith.constant 0 : index
    %c0_5 = arith.constant 0 : index
    %4 = vector.load %arg4[%c0_4, %c0_5] : memref<32x1xf32, #tpu.memory_space<vmem>>, vector<32x1xf32>
    %5 = vector.broadcast %4 : vector<32x1xf32> to vector<32x256xf32>
    %6 = arith.addf %3, %5 : vector<32x256xf32>
    %cst_6 = arith.constant 0.000000e+00 : f32
    %7 = vector.broadcast %cst_6 : f32 to vector<32x256xf32>
    %8 = arith.cmpf ogt, %6, %7 : vector<32x256xf32>
    %cst_7 = arith.constant 0.00999999977 : f32
    %9 = vector.broadcast %cst_7 : f32 to vector<32x256xf32>
    %10 = arith.mulf %9, %6 : vector<32x256xf32>
    %11 = arith.select %8, %6, %10 : vector<32x256xi1>, vector<32x256xf32>
    %12 = arith.truncf %11 : vector<32x256xf32> to vector<32x256xbf16>
    %c0_8 = arith.constant 0 : index
    %c0_9 = arith.constant 0 : index
    %13 = vector.load %arg5[%c0_8, %c0_9] : memref<4x32xbf16, #tpu.memory_space<vmem>>, vector<4x32xbf16>
    %cst_10 = arith.constant dense<0.000000e+00> : vector<4x256xf32>
    %14 = tpu.matmul %13, %12, %cst_10 {dimension_numbers = #tpu.dot_dimension_numbers<[1], [0], [0], [1], [0, 0, 1, 1], [], []>} : vector<4x32xbf16>, vector<32x256xbf16>, vector<4x256xf32> -> vector<4x256xf32>
    %c0_11 = arith.constant 0 : index
    %c0_12 = arith.constant 0 : index
    %15 = vector.load %arg6[%c0_11, %c0_12] : memref<4x1xf32, #tpu.memory_space<vmem>>, vector<4x1xf32>
    %16 = vector.broadcast %15 : vector<4x1xf32> to vector<4x256xf32>
    %17 = arith.addf %14, %16 : vector<4x256xf32>
    %c0_13 = arith.constant 0 : index
    %c0_14 = arith.constant 0 : index
    %c0_15 = arith.constant 0 : index
    %18 = vector.load %arg7[%c0_13, %c0_14, %c0_15] : memref<1x4x256xf32, #tpu.memory_space<vmem>>, vector<1x4x256xf32>
    %19 = vector.shape_cast %18 : vector<1x4x256xf32> to vector<4x256xf32>
    %20 = vector.shape_cast %17 : vector<4x256xf32> to vector<1x4x256xf32>
    tpu.vector_store %arg7[%c0_13, %c0_14, %c0_15], %20 {strides = array<i32>} : memref<1x4x256xf32, #tpu.memory_space<vmem>>, vector<1x4x256xf32>,
    return
  }
  func.func @transform_0(%arg0: i32, %arg1: i32) -> (i32, i32, i32) {
    %c0_i32 = arith.constant 0 : i32
    %c0_i32_0 = arith.constant 0 : i32
    return %arg0, %c0_i32, %arg1 : i32, i32, i32
  }
  func.func @transform_1(%arg0: i32, %arg1: i32) -> (i32, i32) {
    %c0_i32 = arith.constant 0 : i32
    %c0_i32_0 = arith.constant 0 : i32
    %c0_i32_1 = arith.constant 0 : i32
    return %c0_i32, %c0_i32_0 : i32, i32
  }
  func.func @transform_2(%arg0: i32, %arg1: i32) -> (i32, i32) {
    %c0_i32 = arith.constant 0 : i32
    %c0_i32_0 = arith.constant 0 : i32
    %c0_i32_1 = arith.constant 0 : i32
    return %c0_i32, %c0_i32_0 : i32, i32
  }
  func.func @transform_3(%arg0: i32, %arg1: i32) -> (i32, i32) {
    %c0_i32 = arith.constant 0 : i32
    %c0_i32_0 = arith.constant 0 : i32
    %c0_i32_1 = arith.constant 0 : i32
    return %c0_i32, %c0_i32_0 : i32, i32
  }
  func.func @transform_4(%arg0: i32, %arg1: i32) -> (i32, i32) {
    %c0_i32 = arith.constant 0 : i32
    %c0_i32_0 = arith.constant 0 : i32
    %c0_i32_1 = arith.constant 0 : i32
    return %c0_i32, %c0_i32_0 : i32, i32
  }
  func.func @transform_5(%arg0: i32, %arg1: i32) -> (i32, i32, i32) {
    %c0_i32 = arith.constant 0 : i32
    %c0_i32_0 = arith.constant 0 : i32
    return %arg0, %c0_i32, %arg1 : i32, i32, i32
  }
}

</mosaic_0001>

<bundles_post_ra>
// kernel: tpu_custom_call.1
= control target key start
LH: loop header
LB: loop body
LE: loop exit
PB: predicated region body
PF: predicated region fallthrough
CT: control target
= control target key end

     0   :  { %10 = vsyncpa [#allocation3], 0  ;;  %s878_s0 = inlined_call_operand.vmem [shape: bf16[2,4,256], index: 0, kind: input, shape index: {}]   ;;  %s879_s1 = inlined_call_operand.vmem [shape: bf16[32,4], index: 1, kind: input, shape index: {}]   ;;  %s880_s2 = inlined_call_operand.vmem [shape: f32[32,1], index: 2, kind: input, shape index: {}]   ;;  %s881_s3 = inlined_call_operand.vmem [shape: bf16[4,32], index: 3, kind: input, shape index: {}]   ;;  %s882_s4 = inlined_call_operand.vmem [shape: f32[4,1], index: 4, kind: input, shape index: {}]   ;;  %s883_s5 = inlined_call_operand.hbm [shape: f32[2,4,256], index: 5, kind: output, shape index: {}]  }
   0x1   :  { %12 = vsyncpa [#allocation3 + $0x1], 0  ;;  %s742_s18 = smov 0   ;;  %s744_s19 = smov 0  }
   0x2   :  { %s746_s20 = smov 0   ;;  %s748_s21 = smov 0  }
   0x3   :  { %s750_s22 = smov 0   ;;  %s752_s23 = smov 0  }
   0x4 LB: > { %s548_s24 = sadd.s32 4294967295, %s708_s23   ;;  %s549_s25 = sadd.s32 4294967294, %s708_s23   ;;  %s708_s23 = sphi %s752_s23, %s18_s23   ;;  %s704_s22 = sphi %s750_s22, %s890_s22   ;;  %s700_s21 = sphi %s748_s21, %s889_s21   ;;  %s696_s20 = sphi %s746_s20, %s888_s20   ;;  %s692_s19 = sphi %s744_s19, %s887_s19   ;;  %s688_s18 = sphi %s742_s18, %s886_s18  }
   0x5   : > { %s30_s26 = sadd.s32 1, %s704_s22  ;;  %s151_s27 = sadd.s32 1, %s696_s20 }
   0x6   : > { %p32_p0 = scmp.ge.s32.totalorder %s30_s26, 2  ;;  %p161_p1 = scmp.ne.s32.totalorder %s696_s20, %s692_s19 }
   0x7   : > { %p162_p2 = scmp.eq.s32.totalorder %s548_s24, 1  ;;  %p167_p3 = scmp.ne.s32.totalorder %s692_s19, %s688_s18 }
   0x8   : > { %s892_s26 = smov (%p32_p0, %s30_s26), 0  ;;  %p168_p5 = scmp.eq.s32.totalorder %s549_s25, 1 }
   0x9   : > { %p782_p4 = por %p162_p2, %p161_p1  ;;  %s146_s29 = ssub.s32 %s704_s22, %s892_s26 }
   0xa   : > { %p552_p6 = scmp.ge.s32.totalorder %s708_s23, 1  ;;  %p149_p7 = scmp.eq.s32.totalorder %s146_s29, 0 }
   0xb   : > { %p789_p8 = por %p168_p5, %p167_p3  ;;  %p211_p9 = scmp.lt.s32.totalorder %s708_s23, 3 }
   0xc   : > { %s795_s6 = scalar_select %p149_p7, %s696_s20, %s151_s27  }
   0xd   : > { %p212_p10 = pnand %p552_p6, %p211_p9 }
   0xe   : > { %p244_p11 = scmp.lt.s32.totalorder (!%p212_p10), %s700_s21, 1  ;;  %v710_v0 = vmov (!%p212_p10), 0   ;;  %v260_v1 = vld [vmem:[%s880_s2] sm:$0xff] (!%p212_p10)  ;;  %v262_v2 = vld [vmem:[%s880_s2 + $0x10] sm:$0xff] (!%p212_p10)  ;;  %vm310_vm0 = vcmask (!%p212_p10), 1041408   ;;  %v261_v3 = vld [vmem:[%s880_s2 + $0x8] sm:$0xff] (!%p212_p10) }
   0xf   : > { %215 = sbr.rel (%p212_p10) target bundleno = 498 (0x1f2), region = 40  ;;  %349 = vmatprep.mubr.bf16.mxu0 (!%p212_p10), %v710_v0  ;;  %626 = vset.pattern.permute.xlu0 (!%p212_p10), %v710_v0  ;;  %v263_v4 = vld [vmem:[%s880_s2 + $0x18] sm:$0xff] (!%p212_p10)  ;;  %v399_v8 = vld [vmem:[%s882_s4] sm:$0xf] (!%p212_p10)  ;;  %vm303_vm1 = vcmask (!%p212_p10), 31744   ;;  %v629_v10 = vld [vmem:[%s879_s1 + $0x8] sm:$0xff] (!%p212_p10)  }
  0x10   : > { %627 = vset.pattern.permute.xlu1 (!%p212_p10), %v710_v0  ;;  %441 = vmatprep.mubr.bf16.mxu1 (!%p212_p10), %v710_v0  ;;  %v628_v9 = vld [vmem:[%s879_s1] sm:$0xff] (!%p212_p10)   ;;  %vm405_vm10 = vcmask (!%p212_p10), 261120   ;;  %s240_s13 = sand.u32 (!%p212_p10), 1, %s692_s19   ;;  %s569_s15 = sshll.u32 (!%p212_p10), %s700_s21, 7 }
  0x11   : > { %266 = vperm.xlu0 (!%p212_p10), %626, %v260_v1   ;;  %276 = vperm.xlu1 (!%p212_p10), %627, %v262_v2   ;;  %v398_v51 = vld [vmem:[%s881_s3] sm:$0x3] (!%p212_p10)  ;;  %s553_s14 = sshll.u32 (!%p212_p10), %s240_s13, 3  ;;  %s831_s27 = scalar_lea.hbm (!%p212_p10), %s883_s5, %s569_s15 }
  0x12   : > { %s242_s16 = scalar_lea.vmem (!%p212_p10), [#allocation2], %s553_s14  ;;  %s456_s29 = scalar_lea.sflag (!%p212_p10), [#allocation3], %s240_s13 }
  0x15   : > { %271 = vperm.xlu0 (!%p212_p10), %626, %v261_v3   ;;  %281 = vperm.xlu1 (!%p212_p10), %627, %v263_v4  }
  0x16   : > { %s245_s7 = scalar_select %p244_p11, %s700_s21, 1 }
  0x17   : > { %s711_s21 = smov [#allocation2]  }
  0x18   : > { %s568_s12 = sshll.u32 %s245_s7, 2  ;;  %s634_s8 = sshll.u32 %s711_s21, 4  ;;  %s635_s8 = int_to_ptr.vmem [resolvable:$false] %s634_s8 }
  0x19   : > { %s251_s17 = scalar_lea.vmem %s878_s0, %s568_s12  ;;  %402 = vperm.xlu0 %626, %v399_v8   ;;  %s636_s9 = scalar_lea.vmem %s635_s8, 256 }
  0x1a   : > { %v558_v5 = vld.sshfl [vmem:[%s251_s17] sm:$0x33 pattern:$0x76325410]  ;;  %s472_s17 = sshll.u32 %s242_s16, 4  ;;  %s833_s17 = int_to_ptr.vmem [resolvable:$true] %s472_s17 }
  0x1b   : > { %v302_v6 = vcombine.high %v558_v5, %v558_v5  ;;  %v312_v7 = vsel %vm310_vm0, %v558_v5, 0  ;;  %s630_s7 = scalar_lea.vmem %s833_s17, 128  ;;  %p637_p1 = scmp.lt.s32.totalorder %s833_s17, %s635_s8 }
  0x1c   : > { %p631_p12 = scmp.ne.s32.totalorder %s833_s17, %s630_s7  ;;  %p638_p2 = scmp.lt.s32.totalorder %s636_s9, %s630_s7 }
  0x1d   : > { %559 = vmatprep.subr.msk.bf16.mxu0 %vm310_vm0, %v302_v6 }
  0x1e   : > { %318 = vmatpush1.bf16.msra.mxu0 %v312_v7  ;;  %p632_p13 = pnand %p631_p12, %p782_p4  ;;  %p639_p3 = por %p638_p2, %p637_p1 }
  0x20   : > { %p633_p0 = pneg %p632_p13 }
  0x21   : > { %560 = vmatmul.mubr.msk.bf16.vlgmr.msra.gmra.mrb[0].mxu0 %vm303_vm1, %v628_v9 }
  0x22   : > { %359 = vmatprep.mubr.bf16.mxu0 %v710_v0  ;;  %p640_p5 = pnand %p639_p3, %p633_p0 }
  0x29   : > { %561 = vmatmul.mubr.msk.bf16.gmra.mrb[4].mxu0 %vm303_vm1, %v629_v10 }
  0x90   : > { %v267_v11 = vpop.permute.xlu0 %266  ;;  %v277_v22 = vpop.permute.xlu1 %276 }
  0x94   : > { %v272_v15 = vpop.permute.xlu0 %271  ;;  %v282_v35 = vpop.permute.xlu1 %281 }
  0x98   : > { %v403_v52 = vpop.permute.xlu0 %402 }
  0xf4   : > { %v351_v12 = vpop.f32.mrb[0].mxu0 }
  0xf5   : > { %v352_v13 = vadd.f32 %v351_v12, %v267_v11  ;;  %v353_v14 = vpop.f32.mrb[1].mxu0 }
  0xf6   : > { %v354_v16 = vadd.f32 %v353_v14, %v267_v11  ;;  %v355_v17 = vpop.f32.mrb[2].mxu0 }
  0xf7   : > { %v378_v18 = vmul.f32 0.01, %v352_v13  ;;  %v356_v19 = vadd.f32 %v355_v17, %v272_v15  ;;  %v357_v20 = vpop.f32.mrb[3].mxu0  ;;  %vm370_vm2 = vcmp.gt.f32.partialorder %v352_v13, 0.0 }
  0xf8   : > { %v379_v21 = vmul.f32 0.01, %v354_v16  ;;  %v358_v23 = vadd.f32 %v357_v20, %v272_v15  ;;  %vm371_vm3 = vcmp.gt.f32.partialorder %v354_v16, 0.0 }
  0xf9   : > { %v380_v24 = vmul.f32 0.01, %v356_v19  ;;  %vm372_vm4 = vcmp.gt.f32.partialorder %v356_v19, 0.0  ;;  %v386_v26 = vsel %vm370_vm2, %v352_v13, %v378_v18 }
  0xfa   : > { %v381_v25 = vmul.f32 0.01, %v358_v23  ;;  %vm373_vm5 = vcmp.gt.f32.partialorder %v358_v23, 0.0  ;;  %v387_v29 = vsel %vm371_vm3, %v354_v16, %v379_v21 }
  0xfb   : > { %v388_v27 = vsel %vm372_vm4, %v356_v19, %v380_v24 }
  0xfc   : > { %v361_v28 = vpop.f32.mrb[4].mxu0  ;;  %v389_v30 = vsel %vm373_vm5, %v358_v23, %v381_v25  ;;  %v394_v31 = vpack.c.bf16 %v388_v27, %v386_v26 }
  0xfd   : > { %v362_v32 = vadd.f32 %v361_v28, %v277_v22  ;;  %v363_v33 = vpop.f32.mrb[5].mxu0  ;;  %v395_v34 = vpack.c.bf16 %v389_v30, %v387_v29 }
  0xfe   : > { %v364_v36 = vadd.f32 %v363_v33, %v277_v22  ;;  %v365_v37 = vpop.f32.mrb[6].mxu0 }
  0xff   : > { %v382_v38 = vmul.f32 0.01, %v362_v32  ;;  %v366_v39 = vadd.f32 %v365_v37, %v282_v35  ;;  %v367_v40 = vpop.f32.mrb[7].mxu0  ;;  %409 = vmatprep.subr.bf16.mxu1 %v395_v34  ;;  %vm374_vm6 = vcmp.gt.f32.partialorder %v362_v32, 0.0 }
 0x100   : > { %v383_v41 = vmul.f32 0.01, %v364_v36  ;;  %v368_v42 = vadd.f32 %v367_v40, %v282_v35  ;;  %410 = vmatpush1.bf16.msra.mxu1 %v394_v31  ;;  %vm375_vm7 = vcmp.gt.f32.partialorder %v364_v36, 0.0 }
 0x101   : > { %vm376_vm8 = vcmp.gt.f32.partialorder %v366_v39, 0.0  ;;  %v384_v43 = vmul.f32 0.01, %v366_v39  ;;  %v390_v45 = vsel %vm374_vm6, %v362_v32, %v382_v38 }
 0x102   : > { %vm377_vm9 = vcmp.gt.f32.partialorder %v368_v42, 0.0  ;;  %v385_v44 = vmul.f32 0.01, %v368_v42  ;;  %v391_v47 = vsel %vm375_vm7, %v364_v36, %v383_v41 }
 0x103   : > { %v392_v46 = vsel %vm376_vm8, %v366_v39, %v384_v43 }
 0x104   : > { %v393_v48 = vsel %vm377_vm9, %v368_v42, %v385_v44  ;;  %v396_v49 = vpack.c.bf16 %v392_v46, %v390_v45 }
 0x105   : > { %v397_v50 = vpack.c.bf16 %v393_v48, %v391_v47 }
 0x107   : > { %411 = vmatprep.subr.bf16.mxu1 %v397_v50 }
 0x108   : > { %412 = vmatpush1.bf16.msra.mxu1 %v396_v49 }
 0x10b   : > { %562 = vmatmul.mubr.msk.bf16.vlgmr.msra.gmra.mrb[0].mxu1 %vm405_vm10, %v398_v51 }
 0x1de   : > { %v443_v53 = vpop.f32.mrb[0].mxu1 }
 0x1df   : > { %v444_v54 = vadd.f32 %v443_v53, %v403_v52  ;;  %v445_v55 = vpop.f32.mrb[1].mxu1 }
 0x1e0   : > { %v446_v56 = vadd.f32 %v445_v55, %v403_v52  ;;  %v447_v57 = vpop.f32.mrb[2].mxu1 }
 0x1e1   : > { %v448_v58 = vpop.f32.mrb[3].mxu1 }
 0x1e2   : > { %v452_v59 = vcombine.low %v444_v54, %v446_v56 }
 0x1e4   : > { %454 = vst [vmem:[%s242_s16] sm:$0xff] %v452_v59 }
 0x1e5   : > { %643 = shalt.err (!%p640_p5)
}
 0x1e6   : > { %s644_s10 = scalar_lea.hbm %s831_s27, 128  ;;  %s648_s13 = scalar_lea.hbm %s883_s5, 256 }
 0x1e7   : > { %p645_p6 = scmp.ne.s32.totalorder %s831_s27, %s644_s10  ;;  %p649_p10 = scmp.lt.u32.totalorder %s831_s27, %s883_s5 }
 0x1e8   : > { %p650_p11 = scmp.lt.u32.totalorder %s648_s13, %s644_s10  ;;  %p652_p13 = scmp.lt.u32.totalorder %s644_s10, %s831_s27 }
 0x1e9   : > { %p646_p7 = pnand %p645_p6, %p782_p4 }
 0x1ea   : > { %p651_p12 = por %p650_p11, %p649_p10 }
 0x1eb   : > { %p647_p9 = pneg %p646_p7 }
 0x1ec   : > { %p653_p0 = por %p652_p13, %p651_p12 }
 0x1ee   : > { %p654_p1 = pnand %p653_p0, %p647_p9 }
 0x1f0   : > { %657 = shalt.err (!%p654_p1)
}
 0x1f1   : > { %570 = dma.vmem_to_hbm [thread:$0]  (%p782_p4), %s833_s17, 128, %s831_s27, %s456_s29  }
 0x1f2 PF: > { %p576_p2 = scmp.ge.s32.totalorder %s708_s23, 2  ;;  %s484_s16 = sand.u32 1, %s688_s18  }
 0x1f3   : > { %s485_s24 = scalar_lea.sflag [#allocation3], %s484_s16 }
 0x1f4   : > { %p573_p3 = pnand %p576_p2, %p789_p8 }
 0x1f6   : > { %683 = dma.done.wait (!%p573_p3), %s485_s24, 128  }
 0x1f7   : > { %685 = vsyncadd (!%p573_p3), %s485_s24, 4294967168  ;;  %s18_s23 = sadd.s32 1, %s708_s23   ;;  %s886_s18 = smov %s692_s19 }
 0x1f8   : > { %p15_p5 = scmp.ge.s32.totalorder %s18_s23, 4   ;;  %s887_s19 = smov %s696_s20 }
 0x1f9   : > { %s888_s20 = smov %s795_s6  ;;  %s889_s21 = smov %s704_s22 }
 0x1fa   : > { %s890_s22 = smov %s892_s26  ;;  %17 = sbr.rel (!%p15_p5) target bundleno = 4 (0x4), region = 75 }
 0x201   :  { %490 = vsyncpa [#allocation3], 1 }
 0x202   :  { %492 = vsyncpa [#allocation3 + $0x1], 1 }

</bundles_post_ra>
